<compile_context>
chip_gen: v7x
topology: tpu7x:2x2x1
jax: 0.10.0
libtpu: 0.0.40
codegen_flags: <defaults>
</compile_context>

<pallas_src>
import functools

import jax
import jax.numpy as jnp
from jax.experimental import pallas as pl
from jax.experimental.pallas import tpu as pltpu

LANES = 128                         # vreg lane width
_WIDTHS = (2048, 1024, 512, 256, 128)
_BLOCK_BYTES = 4 << 20              # ~4 MiB (f32) streamed per input per step


def _mask_l1_kernel(pred_ref, gt_ref, mask_ref, out_ref, acc_num, acc_den,
                    *, rows, tile_rows, acc_rows, wide):
    j = pl.program_id(0)

    @pl.when(j == 0)
    def _init():
        acc_num[...] = jnp.zeros_like(acc_num)
        acc_den[...] = jnp.zeros_like(acc_den)

    p = pred_ref[...].astype(jnp.float32)
    g = gt_ref[...].astype(jnp.float32)
    m = mask_ref[...].astype(jnp.float32)

    term = jnp.abs(p - g) * m

    # Mask the ragged rows of the last (boundary) block: their contents are
    # unspecified (possibly inf/NaN), so zero both term and mask explicitly.
    if rows % tile_rows != 0:
        ridx = jax.lax.broadcasted_iota(jnp.int32, (tile_rows, wide), 0)
        valid = (j * tile_rows + ridx) < rows
        term = jnp.where(valid, term, 0.0)
        m = jnp.where(valid, m, 0.0)

    # Fold the block down to small (acc_rows, wide) accumulators: pure
    # elementwise VPU adds, hidden under the input DMAs; keeps VMEM scratch
    # tiny and relieves the vld/vst slots.
    if tile_rows == acc_rows:
        acc_num[...] += term
        acc_den[...] += m
    else:
        acc_num[...] += term.reshape(tile_rows // acc_rows, acc_rows, wide).sum(axis=0)
        acc_den[...] += m.reshape(tile_rows // acc_rows, acc_rows, wide).sum(axis=0)

    @pl.when(j == pl.num_programs(0) - 1)
    def _fin():
        # Single cross-lane reduction at the very end.
        num = jnp.sum(acc_num[...])
        den = jnp.sum(acc_den[...])
        # Pack both sums into one lane-dense (8, 128) block:
        # sublane 0 carries sum(|p-g|*m), sublane 1 carries sum(m).
        sub = jax.lax.broadcasted_iota(jnp.int32, out_ref.shape, 0)
        out_ref[...] = jnp.where(sub == 0, num, jnp.where(sub == 1, den, 0.0))


def _choose_layout(total):
    """Largest lane-dense width in _WIDTHS that divides `total` (else 128)."""
    wide = LANES
    for w in _WIDTHS:
        if total >= w and total % w == 0:
            wide = w
            break
    main = (total // wide) * wide   # == total whenever total % 128 == 0
    return wide, main


def _run_reduce(pred2d, gt2d, mask2d, *, rows, wide, tile_rows, acc_rows):
    steps = pl.cdiv(rows, tile_rows)
    kernel = functools.partial(_mask_l1_kernel, rows=rows, tile_rows=tile_rows,
                               acc_rows=acc_rows, wide=wide)
    tile_spec = pl.BlockSpec((tile_rows, wide), lambda j: (j, 0))
    out_spec = pl.BlockSpec((8, LANES), lambda j: (0, 0))

    return pl.pallas_call(
        kernel,
        out_shape=jax.ShapeDtypeStruct((8, LANES), jnp.float32),
        grid_spec=pltpu.PrefetchScalarGridSpec(
            num_scalar_prefetch=0,
            grid=(steps,),
            in_specs=[tile_spec, tile_spec, tile_spec],
            out_specs=out_spec,
            scratch_shapes=[pltpu.VMEM((acc_rows, wide), jnp.float32)] * 2,
        ),
        compiler_params=pltpu.CompilerParams(
            # Resident-accumulator reduction axis -> "arbitrary".
            dimension_semantics=("arbitrary",),
            # ~24 MiB steady state (3 inputs x 2 bufs x 4 MiB) + tiny scratch;
            # 48 MiB leaves headroom and fits v7x's 64 MiB physical VMEM.
            vmem_limit_bytes=48 << 20,
        ),
    )(pred2d, gt2d, mask2d)


@functools.partial(jax.jit, static_argnames=("eps",))
def mask_l1_loss(pred, gt, mask, *, eps=1e-6):
    """MaskL1Loss.forward: (|pred - gt| * mask).sum() / (mask.sum() + eps)."""
    total = pred.size
    pred_f = pred.reshape(-1)
    gt_f = gt.reshape(-1)
    mask_f = mask.reshape(-1)

    wide, main = _choose_layout(total)

    num = jnp.float32(0.0)
    den = jnp.float32(0.0)

    if main > 0:
        rows = main // wide
        target_rows = max(8, _BLOCK_BYTES // (wide * 4))   # ~4 MiB f32 blocks
        tile_rows = rows if rows <= target_rows else target_rows
        acc_rows = 8 if tile_rows % 8 == 0 else tile_rows

        # Pure reshapes / full slices -- no jnp.pad copies of the inputs.
        p2 = pred_f[:main].reshape(rows, wide)
        g2 = gt_f[:main].reshape(rows, wide)
        m2 = mask_f[:main].reshape(rows, wide)

        partials = _run_reduce(p2, g2, m2, rows=rows, wide=wide,
                               tile_rows=tile_rows, acc_rows=acc_rows)
        num = num + partials[0, 0]
        den = den + partials[1, 0]

    tail = total - main
    if tail:  # < 128 elements; negligible plain-jnp reduction
        pt = pred_f[main:].astype(jnp.float32)
        gt_t = gt_f[main:].astype(jnp.float32)
        mt = mask_f[main:].astype(jnp.float32)
        num = num + jnp.sum(jnp.abs(pt - gt_t) * mt)
        den = den + jnp.sum(mt)

    # torch.mean of a 0-d scalar is the scalar itself.
    return num / (den + eps)


if __name__ == "__main__":
    key = jax.random.PRNGKey(0)
    k1, k2, k3 = jax.random.split(key, 3)

    B, C, H, W = 2, 4, 16, 16
    pred = jax.nn.sigmoid(jax.random.normal(k1, (B, C, H, W), jnp.float32))
    gt = (jax.random.uniform(k2, (B, C, H, W)) > 0.7).astype(jnp.float32)
    mask = (jax.random.uniform(k3, (B, C, H, W)) > 0.1).astype(jnp.float32)

    loss = mask_l1_loss(pred, gt, mask)
    loss = jax.block_until_ready(loss)

    ref = jnp.sum(jnp.abs(pred - gt) * mask) / (jnp.sum(mask) + 1e-6)
    assert jnp.isfinite(loss)
    assert jnp.allclose(loss, ref, rtol=1e-5, atol=1e-6), (loss, ref)
    print("KERNEL_OK")
</pallas_src>

<mosaic_0001>
module attributes {stable_mosaic.version = 11 : i64} {
  func.func @_mask_l1_kernel(%arg0: i32, %arg1: memref<1x2048xf32, #tpu.memory_space<vmem>>, %arg2: memref<1x2048xf32, #tpu.memory_space<vmem>>, %arg3: memref<1x2048xf32, #tpu.memory_space<vmem>>, %arg4: memref<8x128xf32, #tpu.memory_space<vmem>>, %arg5: memref<1x2048xf32, #tpu.memory_space<vmem>>, %arg6: memref<1x2048xf32, #tpu.memory_space<vmem>>) attributes {dimension_semantics = [#tpu.dimension_semantics<arbitrary>], iteration_bounds = array<i64: 1>, scalar_prefetch = 0 : i64, scratch_operands = 2 : i64, tpu.core_type = #tpu.core_type<tc>, window_params = [{transform_indices = @transform_0, window_bounds = array<i64: 1, 2048>}, {transform_indices = @transform_1, window_bounds = array<i64: 1, 2048>}, {transform_indices = @transform_2, window_bounds = array<i64: 1, 2048>}, {pipeline_mode = #tpu.pipeline_mode<synchronous>, transform_indices = @transform_3, window_bounds = array<i64: 8, 128>}]} {
    %c0_i32 = arith.constant 0 : i32
    %0 = arith.cmpi eq, %arg0, %c0_i32 : i32
    %1 = arith.extui %0 : i1 to i32
    %c0_i32_0 = arith.constant 0 : i32
    %2 = arith.cmpi ne, %1, %c0_i32_0 : i32
    scf.if %2 {
      %cst = arith.constant 0.000000e+00 : f32
      %18 = vector.broadcast %cst : f32 to vector<1x2048xf32>
      %c0_16 = arith.constant 0 : index
      %c0_17 = arith.constant 0 : index
      %19 = vector.load %arg5[%c0_16, %c0_17] : memref<1x2048xf32, #tpu.memory_space<vmem>>, vector<1x2048xf32>
      tpu.vector_store %arg5[%c0_16, %c0_17], %18 {strides = array<i32>} : memref<1x2048xf32, #tpu.memory_space<vmem>>, vector<1x2048xf32>,
      %cst_18 = arith.constant 0.000000e+00 : f32
      %20 = vector.broadcast %cst_18 : f32 to vector<1x2048xf32>
      %c0_19 = arith.constant 0 : index
      %c0_20 = arith.constant 0 : index
      %21 = vector.load %arg6[%c0_19, %c0_20] : memref<1x2048xf32, #tpu.memory_space<vmem>>, vector<1x2048xf32>
      tpu.vector_store %arg6[%c0_19, %c0_20], %20 {strides = array<i32>} : memref<1x2048xf32, #tpu.memory_space<vmem>>, vector<1x2048xf32>,
    } else {
    }
    %c0 = arith.constant 0 : index
    %c0_1 = arith.constant 0 : index
    %3 = vector.load %arg1[%c0, %c0_1] : memref<1x2048xf32, #tpu.memory_space<vmem>>, vector<1x2048xf32>
    %c0_2 = arith.constant 0 : index
    %c0_3 = arith.constant 0 : index
    %4 = vector.load %arg2[%c0_2, %c0_3] : memref<1x2048xf32, #tpu.memory_space<vmem>>, vector<1x2048xf32>
    %c0_4 = arith.constant 0 : index
    %c0_5 = arith.constant 0 : index
    %5 = vector.load %arg3[%c0_4, %c0_5] : memref<1x2048xf32, #tpu.memory_space<vmem>>, vector<1x2048xf32>
    %6 = arith.subf %3, %4 : vector<1x2048xf32>
    %7 = math.absf %6 : vector<1x2048xf32>
    %8 = arith.mulf %7, %5 : vector<1x2048xf32>
    %c0_6 = arith.constant 0 : index
    %c0_7 = arith.constant 0 : index
    %9 = vector.load %arg5[%c0_6, %c0_7] : memref<1x2048xf32, #tpu.memory_space<vmem>>, vector<1x2048xf32>
    %10 = arith.addf %9, %8 : vector<1x2048xf32>
    %c0_8 = arith.constant 0 : index
    %c0_9 = arith.constant 0 : index
    %11 = vector.load %arg5[%c0_8, %c0_9] : memref<1x2048xf32, #tpu.memory_space<vmem>>, vector<1x2048xf32>
    tpu.vector_store %arg5[%c0_8, %c0_9], %10 {strides = array<i32>} : memref<1x2048xf32, #tpu.memory_space<vmem>>, vector<1x2048xf32>,
    %c0_10 = arith.constant 0 : index
    %c0_11 = arith.constant 0 : index
    %12 = vector.load %arg6[%c0_10, %c0_11] : memref<1x2048xf32, #tpu.memory_space<vmem>>, vector<1x2048xf32>
    %13 = arith.addf %12, %5 : vector<1x2048xf32>
    %c0_12 = arith.constant 0 : index
    %c0_13 = arith.constant 0 : index
    %14 = vector.load %arg6[%c0_12, %c0_13] : memref<1x2048xf32, #tpu.memory_space<vmem>>, vector<1x2048xf32>
    tpu.vector_store %arg6[%c0_12, %c0_13], %13 {strides = array<i32>} : memref<1x2048xf32, #tpu.memory_space<vmem>>, vector<1x2048xf32>,
    %c0_i32_14 = arith.constant 0 : i32
    %15 = arith.cmpi eq, %arg0, %c0_i32_14 : i32
    %16 = arith.extui %15 : i1 to i32
    %c0_i32_15 = arith.constant 0 : i32
    %17 = arith.cmpi ne, %16, %c0_i32_15 : i32
    scf.if %17 {
      %c0_16 = arith.constant 0 : index
      %c0_17 = arith.constant 0 : index
      %18 = vector.load %arg5[%c0_16, %c0_17] : memref<1x2048xf32, #tpu.memory_space<vmem>>, vector<1x2048xf32>
      %19 = vector.shape_cast %18 : vector<1x2048xf32> to vector<1x1x2048xf32>
      %cst = arith.constant dense<0.000000e+00> : vector<1xf32>
      %20 = vector.multi_reduction <add>, %19, %cst [1, 2] : vector<1x1x2048xf32> to vector<1xf32>
      %21 = vector.shape_cast %20 : vector<1xf32> to vector<1x1x1xf32>
      %22 = vector.extract %21[0, 0, 0] : f32 from vector<1x1x1xf32>
      %c0_18 = arith.constant 0 : index
      %c0_19 = arith.constant 0 : index
      %23 = vector.load %arg6[%c0_18, %c0_19] : memref<1x2048xf32, #tpu.memory_space<vmem>>, vector<1x2048xf32>
      %24 = vector.shape_cast %23 : vector<1x2048xf32> to vector<1x1x2048xf32>
      %cst_20 = arith.constant dense<0.000000e+00> : vector<1xf32>
      %25 = vector.multi_reduction <add>, %24, %cst_20 [1, 2] : vector<1x1x2048xf32> to vector<1xf32>
      %26 = vector.shape_cast %25 : vector<1xf32> to vector<1x1x1xf32>
      %27 = vector.extract %26[0, 0, 0] : f32 from vector<1x1x1xf32>
      %28 = tpu.iota {dimensions = array<i32: 0>} : vector<8x128xi32>
      %c0_i32_21 = arith.constant 0 : i32
      %29 = vector.broadcast %c0_i32_21 : i32 to vector<8x128xi32>
      %30 = arith.cmpi eq, %28, %29 : vector<8x128xi32>
      %c1_i32 = arith.constant 1 : i32
      %31 = vector.broadcast %c1_i32 : i32 to vector<8x128xi32>
      %32 = arith.cmpi eq, %28, %31 : vector<8x128xi32>
      %cst_22 = arith.constant 0.000000e+00 : f32
      %33 = vector.broadcast %27 : f32 to vector<8x128xf32>
      %34 = vector.broadcast %cst_22 : f32 to vector<8x128xf32>
      %35 = arith.select %32, %33, %34 : vector<8x128xi1>, vector<8x128xf32>
      %36 = vector.broadcast %22 : f32 to vector<8x128xf32>
      %37 = arith.select %30, %36, %35 : vector<8x128xi1>, vector<8x128xf32>
      %c0_23 = arith.constant 0 : index
      %c0_24 = arith.constant 0 : index
      %38 = vector.load %arg4[%c0_23, %c0_24] : memref<8x128xf32, #tpu.memory_space<vmem>>, vector<8x128xf32>
      tpu.vector_store %arg4[%c0_23, %c0_24], %37 {strides = array<i32>} : memref<8x128xf32, #tpu.memory_space<vmem>>, vector<8x128xf32>,
    } else {
    }
    return
  }
  func.func @transform_0(%arg0: i32) -> (i32, i32) {
    %c0_i32 = arith.constant 0 : i32
    %c0_i32_0 = arith.constant 0 : i32
    return %arg0, %c0_i32 : i32, i32
  }
  func.func @transform_1(%arg0: i32) -> (i32, i32) {
    %c0_i32 = arith.constant 0 : i32
    %c0_i32_0 = arith.constant 0 : i32
    return %arg0, %c0_i32 : i32, i32
  }
  func.func @transform_2(%arg0: i32) -> (i32, i32) {
    %c0_i32 = arith.constant 0 : i32
    %c0_i32_0 = arith.constant 0 : i32
    return %arg0, %c0_i32 : i32, i32
  }
  func.func @transform_3(%arg0: i32) -> (i32, i32) {
    %c0_i32 = arith.constant 0 : i32
    %c0_i32_0 = arith.constant 0 : i32
    %c0_i32_1 = arith.constant 0 : i32
    return %c0_i32, %c0_i32_0 : i32, i32
  }
}

</mosaic_0001>

<bundles_post_ra>
// kernel: mask_l1_loss.1
= control target key start
LH: loop header
LB: loop body
LE: loop exit
PB: predicated region body
PF: predicated region fallthrough
CT: control target
= control target key end

     0   :  { %v53_v0 = vlaneseq  ;;  %vm133_vm0 = vcmask 1040384   ;;  %s480_s0 = inlined_call_operand.vmem [shape: f32[1,2048], index: 0, kind: input, shape index: {}]   ;;  %s481_s1 = inlined_call_operand.vmem [shape: f32[1,2048], index: 1, kind: input, shape index: {}]   ;;  %s482_s2 = inlined_call_operand.vmem [shape: f32[1,2048], index: 2, kind: input, shape index: {}]   ;;  %s483_s3 = inlined_call_operand.vmem [shape: f32[8,128], index: 3, kind: output, shape index: {}]  }
   0x1   :  { %v22_v1 = vld [vmem:[%s480_s0] sm:$0xff]  ;;  %v23_v5 = vld [vmem:[%s480_s0 + $0x8] sm:$0xff] }
   0x2   :  { %v24_v2 = vld [vmem:[%s481_s1] sm:$0xff]  ;;  %v341_v4 = vshrl.u32 %v53_v0, 7  ;;  %v25_v7 = vld [vmem:[%s481_s1 + $0x8] sm:$0xff] }
   0x3   :  { %v28_v3 = vsub.f32 %v22_v1, %v24_v2  ;;  %v349_v6 = vld [vmem:[%s482_s2] sm:$0xff]  ;;  %v29_v14 = vsub.f32 %v23_v5, %v25_v7  ;;  %v383_v23 = vld [vmem:[%s482_s2 + $0x8] sm:$0xff] }
   0x4   :  { %v355_v9 = vsub.s32 0, %v341_v4  ;;  %v358_v10 = vsub.s32 1, %v341_v4  ;;  %v361_v11 = vsub.s32 2, %v341_v4  ;;  %v365_v13 = vsub.s32 3, %v341_v4 }
   0x5   :  { %v30_v8 = vand.u32 2147483647, %v28_v3  ;;  %v371_v18 = vsub.s32 4, %v341_v4  ;;  %v375_v20 = vsub.s32 5, %v341_v4  ;;  %v31_v21 = vand.u32 2147483647, %v29_v14 }
   0x6   :  { %v378_v22 = vsub.s32 6, %v341_v4  ;;  %v391_v30 = vsub.s32 7, %v341_v4  ;;  %v185_v36 = vrot.slane %v349_v6, %v358_v10  ;;  %v189_v37 = vrot.slane %v349_v6, %v361_v11 }
   0x7   :  { %v32_v12 = vmul.f32 %v30_v8, %v349_v6  ;;  %v395_v32 = vmul.f32 %v31_v21, %v383_v23  ;;  %v181_v39 = vrot.slane %v349_v6, %v355_v9  ;;  %v193_v42 = vrot.slane %v349_v6, %v365_v13 }
   0x8   :  { %v197_v45 = vrot.slane %v349_v6, %v371_v18  ;;  %v259_v48 = vsel %vm133_vm0, %v185_v36, 0.0  ;;  %v261_v49 = vsel %vm133_vm0, %v189_v37, 0.0  ;;  %v201_v54 = vrot.slane %v349_v6, %v375_v20 }
   0x9   :  { %v56_v15 = vrot.slane %v32_v12, %v355_v9  ;;  %v60_v16 = vrot.slane %v32_v12, %v358_v10  ;;  %v64_v17 = vrot.slane %v32_v12, %v361_v11  ;;  %v68_v19 = vrot.slane %v32_v12, %v365_v13 }
   0xa   :  { %v72_v24 = vrot.slane %v32_v12, %v371_v18  ;;  %v76_v29 = vrot.slane %v32_v12, %v375_v20  ;;  %v80_v34 = vrot.slane %v32_v12, %v378_v22  ;;  %v84_v40 = vrot.slane %v32_v12, %v391_v30 }
   0xb   :  { %v134_v25 = vsel %vm133_vm0, %v56_v15, 0.0  ;;  %v135_v26 = vsel %vm133_vm0, %v60_v16, 0.0  ;;  %v137_v27 = vsel %vm133_vm0, %v64_v17, 0.0  ;;  %v139_v31 = vsel %vm133_vm0, %v68_v19, 0.0 }
   0xc   :  { %v136_v28 = vadd.f32 %v135_v26, %v134_v25  ;;  %v141_v35 = vsel %vm133_vm0, %v72_v24, 0.0  ;;  %v143_v41 = vsel %vm133_vm0, %v76_v29, 0.0  ;;  %v88_v43 = vrot.slane %v395_v32, %v355_v9 }
   0xd   :  { %v145_v46 = vsel %vm133_vm0, %v80_v34, 0.0  ;;  %v258_v47 = vsel %vm133_vm0, %v181_v39, 0.0  ;;  %v92_v52 = vrot.slane %v395_v32, %v358_v10  ;;  %v147_v53 = vsel %vm133_vm0, %v84_v40, 0.0 }
   0xe   :  { %v138_v33 = vadd.f32 %v137_v27, %v136_v28  ;;  %v260_v51 = vadd.f32 %v259_v48, %v258_v47  ;;  %v263_v55 = vsel %vm133_vm0, %v193_v42, 0.0  ;;  %v96_v58 = vrot.slane %v395_v32, %v361_v11 }
   0xf   :  { %v149_v59 = vsel %vm133_vm0, %v88_v43, 0.0  ;;  %v205_v60 = vrot.slane %v349_v6, %v378_v22  ;;  %v265_v61 = vsel %vm133_vm0, %v197_v45, 0.0  ;;  %v100_v0 = vrot.slane %v395_v32, %v365_v13 }
  0x10   :  { %v140_v38 = vadd.f32 %v139_v31, %v138_v33  ;;  %v262_v57 = vadd.f32 %v261_v49, %v260_v51  ;;  %v151_v1 = vsel %vm133_vm0, %v92_v52, 0.0  ;;  %v209_v2 = vrot.slane %v349_v6, %v391_v30 }
  0x11   :  { %v267_v3 = vsel %vm133_vm0, %v201_v54, 0.0  ;;  %v104_v8 = vrot.slane %v395_v32, %v371_v18  ;;  %v153_v12 = vsel %vm133_vm0, %v96_v58, 0.0  ;;  %v213_v14 = vrot.slane %v383_v23, %v355_v9 }
  0x12   :  { %v142_v44 = vadd.f32 %v141_v35, %v140_v38  ;;  %v264_v63 = vadd.f32 %v263_v55, %v262_v57  ;;  %v269_v15 = vsel %vm133_vm0, %v205_v60, 0.0  ;;  %v108_v19 = vrot.slane %v395_v32, %v375_v20 }
  0x13   :  { %v155_v6 = vsel %vm133_vm0, %v100_v0, 0.0  ;;  %v217_v21 = vrot.slane %v383_v23, %v358_v10  ;;  %v271_v24 = vsel %vm133_vm0, %v209_v2, 0.0  ;;  %v112_v27 = vrot.slane %v395_v32, %v378_v22 }
  0x14   :  { %v144_v50 = vadd.f32 %v143_v41, %v142_v44  ;;  %v266_v7 = vadd.f32 %v265_v61, %v264_v63  ;;  %v157_v9 = vsel %vm133_vm0, %v104_v8, 0.0  ;;  %v221_v28 = vrot.slane %v383_v23, %v361_v11 }
  0x15   :  { %v273_v29 = vsel %vm133_vm0, %v213_v14, 0.0  ;;  %v116_v34 = vrot.slane %v395_v32, %v391_v30  ;;  %v159_v10 = vsel %vm133_vm0, %v108_v19, 0.0  ;;  %v225_v35 = vrot.slane %v383_v23, %v365_v13 }
  0x16   :  { %v146_v56 = vadd.f32 %v145_v46, %v144_v50  ;;  %v268_v17 = vadd.f32 %v267_v3, %v266_v7  ;;  %v275_v36 = vsel %vm133_vm0, %v217_v21, 0.0  ;;  %v161_v39 = vsel %vm133_vm0, %v112_v27, 0.0 }
  0x17   :  { %v229_v11 = vrot.slane %v383_v23, %v371_v18  ;;  %v277_v40 = vsel %vm133_vm0, %v221_v28, 0.0  ;;  %v163_v32 = vsel %vm133_vm0, %v116_v34, 0.0  ;;  %v233_v43 = vrot.slane %v383_v23, %v375_v20 }
  0x18   :  { %v148_v62 = vadd.f32 %v147_v53, %v146_v56  ;;  %v270_v26 = vadd.f32 %v269_v15, %v268_v17  ;;  %v279_v13 = vsel %vm133_vm0, %v225_v35, 0.0  ;;  %v237_v46 = vrot.slane %v383_v23, %v378_v22 }
  0x19   :  { %v281_v47 = vsel %vm133_vm0, %v229_v11, 0.0  ;;  %v241_v49 = vrot.slane %v383_v23, %v391_v30  ;;  %v283_v50 = vsel %vm133_vm0, %v233_v43, 0.0  ;;  %vm301_vm1 = vcmp.eq.s32.totalorder %v341_v4, 1 }
  0x1a   :  { %v150_v5 = vadd.f32 %v149_v59, %v148_v62  ;;  %v272_v33 = vadd.f32 %v271_v24, %v270_v26  ;;  %v285_v20 = vsel %vm133_vm0, %v237_v46, 0.0  ;;  %vm300_vm2 = vcmp.eq.s32.totalorder %v341_v4, 0 }
  0x1b   :  { %v287_v53 = vsel %vm133_vm0, %v241_v49, 0.0 }
  0x1c   :  { %v152_v16 = vadd.f32 %v151_v1, %v150_v5  ;;  %v274_v38 = vadd.f32 %v273_v29, %v272_v33 }
  0x1e   :  { %v154_v25 = vadd.f32 %v153_v12, %v152_v16  ;;  %v276_v42 = vadd.f32 %v275_v36, %v274_v38 }
  0x20   :  { %v156_v31 = vadd.f32 %v155_v6, %v154_v25  ;;  %v278_v45 = vadd.f32 %v277_v40, %v276_v42 }
  0x22   :  { %v158_v37 = vadd.f32 %v157_v9, %v156_v31  ;;  %v280_v18 = vadd.f32 %v279_v13, %v278_v45 }
  0x24   :  { %v160_v41 = vadd.f32 %v159_v10, %v158_v37  ;;  %v282_v51 = vadd.f32 %v281_v47, %v280_v18 }
  0x26   :  { %v162_v44 = vadd.f32 %v161_v39, %v160_v41  ;;  %v284_v52 = vadd.f32 %v283_v50, %v282_v51 }
  0x28   :  { %v164_v48 = vadd.f32 %v163_v32, %v162_v44  ;;  %v286_v54 = vadd.f32 %v285_v20, %v284_v52 }
  0x2a   :  { %165 = vadd.xlane.f32.xlu0 %v164_v48  ;;  %v288_v55 = vadd.f32 %v287_v53, %v286_v54 }
  0x2e   :  { %289 = vadd.xlane.f32.xlu0 %v288_v55 }
  0xb7   :  { %v166_v22 = vpop.xlane.xlu0 %165 }
  0xb8   :  { %v167_v56 = vrot.slane %v166_v22, 4 }
  0xba   :  { %v168_v57 = vadd.f32 %v167_v56, %v166_v22 }
  0xbb   :  { %v290_v60 = vpop.xlane.xlu0 %289 }
  0xbc   :  { %v169_v58 = vrot.slane %v168_v57, 2  ;;  %v291_v61 = vrot.slane %v290_v60, 4 }
  0xbe   :  { %v170_v59 = vadd.f32 %v169_v58, %v168_v57  ;;  %v292_v30 = vadd.f32 %v291_v61, %v290_v60 }
  0xc0   :  { %v171_v23 = vrot.slane %v170_v59, 1  ;;  %v293_v63 = vrot.slane %v292_v30, 2 }
  0xc2   :  { %v172_v62 = vadd.f32 %v171_v23, %v170_v59  ;;  %v294_v0 = vadd.f32 %v293_v63, %v292_v30 }
  0xc4   :  { %311 = vpush %v172_v62  ;;  %v295_v1 = vrot.slane %v294_v0, 1 }
  0xc6   :  { %v296_v2 = vadd.f32 %v295_v1, %v294_v0 }
  0xc8   :  { %313 = vpush %v296_v2 }
  0xf5   :  { %s312_s2 = spop %311 }
  0xf6   :  { %v304_v5 = vstv %s312_s2 }
  0xf9   :  { %s314_s22 = spop %313 }
  0xfa   :  { %v302_v3 = vstv %s314_s22 }
  0xfb   :  { %v303_v7 = vsel %vm301_vm1, %v302_v3, 0.0 }
  0xfc   :  { %v305_v8 = vsel %vm300_vm2, %v304_v5, %v303_v7 }
  0xfd   :  { %306 = vst [vmem:[%s483_s3] sm:$0xff] %v305_v8 }

</bundles_post_ra>
